<compile_context>
chip_gen: v5e
topology: v5e:2x2
jax: 0.10.0
libtpu: 0.0.40
codegen_flags: <defaults>
</compile_context>

<pallas_src>
import functools

import jax
import jax.numpy as jnp
from jax.experimental import pallas as pl
from jax.experimental.pallas import tpu as pltpu


def _round_up(n, m):
    return ((n + m - 1) // m) * m


def _cdiv(a, b):
    return (a + b - 1) // b


# Smallest per-core physical VMEM across v5e/v6e/v7x generations (v7x: 64 MiB).
_VMEM_BUDGET_BYTES = 64 << 20


def _mlp_kernel(*refs, n_layers, compute_dtype):
    """Fused MLP body. refs = (x, w0, b0, w1, b1, ..., out)."""
    x_ref = refs[0]
    o_ref = refs[-1]
    wb = refs[1:-1]

    # Single cast of the input tile to the matmul operand dtype (no f32 round
    # trip); accumulation stays f32 via preferred_element_type.
    h = x_ref[...].astype(compute_dtype)
    for i in range(n_layers):
        w = wb[2 * i][...]          # (Din[_pad], Dout_pad), compute_dtype
        b = wb[2 * i + 1][...]      # (1, Dout_pad), f32
        y = jnp.dot(h, w, preferred_element_type=jnp.float32)
        y = y + b                   # f32 epilogue (safe on v5e: no bf16 VPU)
        if i < n_layers - 1:        # ReLU between all but the last layer
            y = jnp.maximum(y, 0.0)
            h = y.astype(compute_dtype)   # re-quantize once for next matmul
        else:
            h = y
    o_ref[...] = h.astype(o_ref.dtype)


def init_mlp_params(key, dims):
    """torch.nn.Linear-style init (U(-k, k), k = 1/sqrt(fan_in))."""
    params = []
    for i in range(len(dims) - 1):
        key, kw, kb = jax.random.split(key, 3)
        fan_in, fan_out = dims[i], dims[i + 1]
        bound = 1.0 / jnp.sqrt(fan_in)
        w = jax.random.uniform(kw, (fan_in, fan_out), jnp.float32,
                               minval=-bound, maxval=bound)
        b = jax.random.uniform(kb, (fan_out,), jnp.float32,
                               minval=-bound, maxval=bound)
        params.append((w, b))
    return params


def prepare_params(params, compute_dtype=jnp.bfloat16):
    """One-time prep: pad hidden/output feature dims to multiples of 128
    (lane-dense stores), keep the very first input dim unpadded so x needs no
    feature padding, cast W to the matmul operand dtype; biases stay f32 for
    the f32 epilogue.  Padded rows/cols are zero, hence mathematically inert.
    TODO(synk): optional fp8 weight path on v7x would halve resident VMEM."""
    padded = []
    prev_out_p = None
    for idx, (w, b) in enumerate(params):
        d_in, d_out = w.shape
        d_in_p = d_in if idx == 0 else prev_out_p
        d_out_p = _round_up(d_out, 128)
        wp = jnp.zeros((d_in_p, d_out_p), compute_dtype)
        wp = wp.at[:d_in, :d_out].set(w.astype(compute_dtype))
        bp = jnp.zeros((1, d_out_p), jnp.float32).at[0, :d_out].set(
            b.astype(jnp.float32))
        padded.append((wp, bp))
        prev_out_p = d_out_p
    return padded


def mlp_forward(padded_params, x, out_dim, compute_dtype=jnp.bfloat16):
    """Fused forward pass. `padded_params` from prepare_params(); `out_dim` is
    the true (unpadded) output feature count."""
    batch, d_in = x.shape
    n_layers = len(padded_params)
    assert padded_params[0][0].shape[0] == d_in, "x features mismatch layer 0"
    d_out_p = padded_params[-1][0].shape[1]

    x_isz = jnp.dtype(x.dtype).itemsize
    sub = max(8, (8 * 4) // x_isz)          # 8 sublanes for f32, 16 for bf16

    param_bytes = sum(int(w.size) * jnp.dtype(w.dtype).itemsize
                      + int(b.size) * jnp.dtype(b.dtype).itemsize
                      for w, b in padded_params)
    widest = max(int(w.shape[1]) for w, _ in padded_params)

    def vmem_need(tile_m, n_weight_buffers):
        act = 2 * tile_m * (d_in + d_out_p) * x_isz    # double-buffered x/out
        inter = 2 * tile_m * widest * 4                 # live f32 intermediates
        return n_weight_buffers * param_bytes + act + inter

    # --- Batch tiling: big tiles (<= 512) amortize the ~0.35 us/step grid
    # overhead; >=2 tiles whenever the batch allows it so the "parallel" axis
    # actually spans both v7x TensorCores.
    MAX_TM = 512
    b_sub = _round_up(batch, sub)
    if b_sub <= sub:
        tm = b_sub
    else:
        n_tiles = max(2, _cdiv(b_sub, MAX_TM))
        tm = _round_up(_cdiv(b_sub, n_tiles), sub)
    # Shrink the batch tile if the VMEM estimate exceeds the v7x budget.
    while vmem_need(tm, 1) > _VMEM_BUDGET_BYTES and tm > sub:
        tm = max(sub, _round_up(tm // 2, sub))
    if vmem_need(tm, 1) > _VMEM_BUDGET_BYTES:
        # TODO(synk): stream weights per layer (pltpu.emit_pipeline over the
        # layer axis) when the resident-parameter footprint exceeds VMEM.
        raise NotImplementedError(
            "MLP parameters do not fit in VMEM for the all-resident kernel")

    batch_p = _round_up(batch, tm)
    grid_n = batch_p // tm

    # Pad batch rows only when misaligned (padded rows are inert, sliced off).
    x_in = x if batch_p == batch else jnp.pad(x, ((0, batch_p - batch), (0, 0)))

    kernel = functools.partial(_mlp_kernel, n_layers=n_layers,
                               compute_dtype=compute_dtype)

    def build_and_run(single_buffer_weights):
        w_kwargs = ({"pipeline_mode": pl.Buffered(1)}
                    if single_buffer_weights else {})
        in_specs = [pl.BlockSpec((tm, d_in), lambda i: (i, 0))]
        flat_inputs = [x_in]
        for w, b in padded_params:
            # Constant index_map => fully resident; single-buffered to avoid a
            # wasted second VMEM copy of every W and b.
            in_specs.append(pl.BlockSpec(w.shape, lambda i: (0, 0), **w_kwargs))
            in_specs.append(pl.BlockSpec(b.shape, lambda i: (0, 0), **w_kwargs))
            flat_inputs.extend([w, b])
        n_wbuf = 1 if single_buffer_weights else 2
        vmem_limit = int(min(max(2 * vmem_need(tm, n_wbuf), 16 << 20),
                             _VMEM_BUDGET_BYTES))
        return pl.pallas_call(
            kernel,
            out_shape=jax.ShapeDtypeStruct((batch_p, d_out_p), x.dtype),
            grid=(grid_n,),
            in_specs=in_specs,
            out_specs=pl.BlockSpec((tm, d_out_p), lambda i: (i, 0)),
            compiler_params=pltpu.CompilerParams(
                dimension_semantics=("parallel",),
                vmem_limit_bytes=vmem_limit,
            ),
        )(*flat_inputs)

    try:
        out_p = jax.block_until_ready(build_and_run(True))
    except Exception:
        # Some jax builds may reject single-buffered inputs; fall back to
        # default double-buffering (identical math, extra VMEM only).
        out_p = build_and_run(False)

    if batch_p != batch or d_out_p != out_dim:
        out_p = out_p[:batch, :out_dim]
    return out_p


def mlp_reference(params, x):
    """Pure-JAX f32 reference (matches the PyTorch module semantics)."""
    n_layers = len(params)
    for i, (w, b) in enumerate(params):
        x = x @ w + b
        if i < n_layers - 1:
            x = jnp.maximum(x, 0.0)
    return x


if __name__ == "__main__":
    dims = [32, 64, 64, 16]   # MLP(dims): 3 Linear layers, ReLU after first two
    batch = 8

    key = jax.random.PRNGKey(0)
    key, kx = jax.random.split(key)
    x = jax.random.normal(kx, (batch, dims[0]), jnp.float32)
    params = init_mlp_params(key, dims)
    ref = mlp_reference(params, x)

    # f32-operand path: strict check against the pure-JAX reference.
    p_f32 = prepare_params(params, jnp.float32)
    out = jax.block_until_ready(mlp_forward(p_f32, x, dims[-1], jnp.float32))
    assert out.shape == (batch, dims[-1])
    assert jnp.allclose(out, ref, atol=1e-5, rtol=1e-5), "f32 mismatch vs reference"

    # bf16-operand / f32-accumulate path (MXU fast path on v6e/v7x), looser tol.
    p_bf16 = prepare_params(params, jnp.bfloat16)
    out_bf = jax.block_until_ready(mlp_forward(p_bf16, x, dims[-1], jnp.bfloat16))
    assert out_bf.shape == (batch, dims[-1])
    assert jnp.allclose(out_bf, ref, atol=1e-1, rtol=5e-2), "bf16 mismatch vs reference"

    print("KERNEL_OK")
</pallas_src>

<mosaic_0001>
module attributes {stable_mosaic.version = 11 : i64} {
  func.func @_mlp_kernel(%arg0: i32, %arg1: memref<8x32xf32, #tpu.memory_space<vmem>>, %arg2: memref<32x128xf32, #tpu.memory_space<vmem>>, %arg3: memref<1x128xf32, #tpu.memory_space<vmem>>, %arg4: memref<128x128xf32, #tpu.memory_space<vmem>>, %arg5: memref<1x128xf32, #tpu.memory_space<vmem>>, %arg6: memref<128x128xf32, #tpu.memory_space<vmem>>, %arg7: memref<1x128xf32, #tpu.memory_space<vmem>>, %arg8: memref<8x128xf32, #tpu.memory_space<vmem>>) attributes {dimension_semantics = [#tpu.dimension_semantics<parallel>], iteration_bounds = array<i64: 1>, scalar_prefetch = 0 : i64, scratch_operands = 0 : i64, tpu.core_type = #tpu.core_type<tc>, window_params = [{transform_indices = @transform_0, window_bounds = array<i64: 8, 32>}, {pipeline_mode = #tpu.pipeline_mode<synchronous>, transform_indices = @transform_1, window_bounds = array<i64: 32, 128>}, {pipeline_mode = #tpu.pipeline_mode<synchronous>, transform_indices = @transform_2, window_bounds = array<i64: 1, 128>}, {pipeline_mode = #tpu.pipeline_mode<synchronous>, transform_indices = @transform_3, window_bounds = array<i64: 128, 128>}, {pipeline_mode = #tpu.pipeline_mode<synchronous>, transform_indices = @transform_4, window_bounds = array<i64: 1, 128>}, {pipeline_mode = #tpu.pipeline_mode<synchronous>, transform_indices = @transform_5, window_bounds = array<i64: 128, 128>}, {pipeline_mode = #tpu.pipeline_mode<synchronous>, transform_indices = @transform_6, window_bounds = array<i64: 1, 128>}, {transform_indices = @transform_7, window_bounds = array<i64: 8, 128>}]} {
    %c0 = arith.constant 0 : index
    %c0_0 = arith.constant 0 : index
    %0 = vector.load %arg1[%c0, %c0_0] : memref<8x32xf32, #tpu.memory_space<vmem>>, vector<8x32xf32>
    %c0_1 = arith.constant 0 : index
    %c0_2 = arith.constant 0 : index
    %1 = vector.load %arg2[%c0_1, %c0_2] : memref<32x128xf32, #tpu.memory_space<vmem>>, vector<32x128xf32>
    %c0_3 = arith.constant 0 : index
    %c0_4 = arith.constant 0 : index
    %2 = vector.load %arg3[%c0_3, %c0_4] : memref<1x128xf32, #tpu.memory_space<vmem>>, vector<1x128xf32>
    %cst = arith.constant dense<0.000000e+00> : vector<8x128xf32>
    %3 = tpu.matmul %0, %1, %cst {dimension_numbers = #tpu.dot_dimension_numbers<[1], [0], [0], [1], [0, 0, 1, 1], [], []>} : vector<8x32xf32>, vector<32x128xf32>, vector<8x128xf32> -> vector<8x128xf32>
    %4 = vector.broadcast %2 : vector<1x128xf32> to vector<8x128xf32>
    %5 = arith.addf %3, %4 : vector<8x128xf32>
    %cst_5 = arith.constant 0.000000e+00 : f32
    %6 = vector.broadcast %cst_5 : f32 to vector<8x128xf32>
    %7 = arith.maximumf %5, %6 : vector<8x128xf32>
    %c0_6 = arith.constant 0 : index
    %c0_7 = arith.constant 0 : index
    %8 = vector.load %arg4[%c0_6, %c0_7] : memref<128x128xf32, #tpu.memory_space<vmem>>, vector<128x128xf32>
    %c0_8 = arith.constant 0 : index
    %c0_9 = arith.constant 0 : index
    %9 = vector.load %arg5[%c0_8, %c0_9] : memref<1x128xf32, #tpu.memory_space<vmem>>, vector<1x128xf32>
    %cst_10 = arith.constant dense<0.000000e+00> : vector<8x128xf32>
    %10 = tpu.matmul %7, %8, %cst_10 {dimension_numbers = #tpu.dot_dimension_numbers<[1], [0], [0], [1], [0, 0, 1, 1], [], []>} : vector<8x128xf32>, vector<128x128xf32>, vector<8x128xf32> -> vector<8x128xf32>
    %11 = vector.broadcast %9 : vector<1x128xf32> to vector<8x128xf32>
    %12 = arith.addf %10, %11 : vector<8x128xf32>
    %cst_11 = arith.constant 0.000000e+00 : f32
    %13 = vector.broadcast %cst_11 : f32 to vector<8x128xf32>
    %14 = arith.maximumf %12, %13 : vector<8x128xf32>
    %c0_12 = arith.constant 0 : index
    %c0_13 = arith.constant 0 : index
    %15 = vector.load %arg6[%c0_12, %c0_13] : memref<128x128xf32, #tpu.memory_space<vmem>>, vector<128x128xf32>
    %c0_14 = arith.constant 0 : index
    %c0_15 = arith.constant 0 : index
    %16 = vector.load %arg7[%c0_14, %c0_15] : memref<1x128xf32, #tpu.memory_space<vmem>>, vector<1x128xf32>
    %cst_16 = arith.constant dense<0.000000e+00> : vector<8x128xf32>
    %17 = tpu.matmul %14, %15, %cst_16 {dimension_numbers = #tpu.dot_dimension_numbers<[1], [0], [0], [1], [0, 0, 1, 1], [], []>} : vector<8x128xf32>, vector<128x128xf32>, vector<8x128xf32> -> vector<8x128xf32>
    %18 = vector.broadcast %16 : vector<1x128xf32> to vector<8x128xf32>
    %19 = arith.addf %17, %18 : vector<8x128xf32>
    %c0_17 = arith.constant 0 : index
    %c0_18 = arith.constant 0 : index
    %20 = vector.load %arg8[%c0_17, %c0_18] : memref<8x128xf32, #tpu.memory_space<vmem>>, vector<8x128xf32>
    tpu.vector_store %arg8[%c0_17, %c0_18], %19 {strides = array<i32>} : memref<8x128xf32, #tpu.memory_space<vmem>>, vector<8x128xf32>,
    return
  }
  func.func @transform_0(%arg0: i32) -> (i32, i32) {
    %c0_i32 = arith.constant 0 : i32
    %c0_i32_0 = arith.constant 0 : i32
    return %arg0, %c0_i32 : i32, i32
  }
  func.func @transform_1(%arg0: i32) -> (i32, i32) {
    %c0_i32 = arith.constant 0 : i32
    %c0_i32_0 = arith.constant 0 : i32
    %c0_i32_1 = arith.constant 0 : i32
    return %c0_i32, %c0_i32_0 : i32, i32
  }
  func.func @transform_2(%arg0: i32) -> (i32, i32) {
    %c0_i32 = arith.constant 0 : i32
    %c0_i32_0 = arith.constant 0 : i32
    %c0_i32_1 = arith.constant 0 : i32
    return %c0_i32, %c0_i32_0 : i32, i32
  }
  func.func @transform_3(%arg0: i32) -> (i32, i32) {
    %c0_i32 = arith.constant 0 : i32
    %c0_i32_0 = arith.constant 0 : i32
    %c0_i32_1 = arith.constant 0 : i32
    return %c0_i32, %c0_i32_0 : i32, i32
  }
  func.func @transform_4(%arg0: i32) -> (i32, i32) {
    %c0_i32 = arith.constant 0 : i32
    %c0_i32_0 = arith.constant 0 : i32
    %c0_i32_1 = arith.constant 0 : i32
    return %c0_i32, %c0_i32_0 : i32, i32
  }
  func.func @transform_5(%arg0: i32) -> (i32, i32) {
    %c0_i32 = arith.constant 0 : i32
    %c0_i32_0 = arith.constant 0 : i32
    %c0_i32_1 = arith.constant 0 : i32
    return %c0_i32, %c0_i32_0 : i32, i32
  }
  func.func @transform_6(%arg0: i32) -> (i32, i32) {
    %c0_i32 = arith.constant 0 : i32
    %c0_i32_0 = arith.constant 0 : i32
    %c0_i32_1 = arith.constant 0 : i32
    return %c0_i32, %c0_i32_0 : i32, i32
  }
  func.func @transform_7(%arg0: i32) -> (i32, i32) {
    %c0_i32 = arith.constant 0 : i32
    %c0_i32_0 = arith.constant 0 : i32
    return %arg0, %c0_i32 : i32, i32
  }
}

module attributes {stable_mosaic.version = 11 : i64} {
  func.func @_mlp_kernel(%arg0: i32, %arg1: memref<8x32xf32, #tpu.memory_space<vmem>>, %arg2: memref<32x128xf32, #tpu.memory_space<vmem>>, %arg3: memref<1x128xf32, #tpu.memory_space<vmem>>, %arg4: memref<128x128xf32, #tpu.memory_space<vmem>>, %arg5: memref<1x128xf32, #tpu.memory_space<vmem>>, %arg6: memref<128x128xf32, #tpu.memory_space<vmem>>, %arg7: memref<1x128xf32, #tpu.memory_space<vmem>>, %arg8: memref<8x128xf32, #tpu.memory_space<vmem>>) attributes {dimension_semantics = [#tpu.dimension_semantics<parallel>], iteration_bounds = array<i64: 1>, scalar_prefetch = 0 : i64, scratch_operands = 0 : i64, tpu.core_type = #tpu.core_type<tc>, window_params = [{transform_indices = @transform_0, window_bounds = array<i64: 8, 32>}, {pipeline_mode = #tpu.pipeline_mode<synchronous>, transform_indices = @transform_1, window_bounds = array<i64: 32, 128>}, {pipeline_mode = #tpu.pipeline_mode<synchronous>, transform_indices = @transform_2, window_bounds = array<i64: 1, 128>}, {pipeline_mode = #tpu.pipeline_mode<synchronous>, transform_indices = @transform_3, window_bounds = array<i64: 128, 128>}, {pipeline_mode = #tpu.pipeline_mode<synchronous>, transform_indices = @transform_4, window_bounds = array<i64: 1, 128>}, {pipeline_mode = #tpu.pipeline_mode<synchronous>, transform_indices = @transform_5, window_bounds = array<i64: 128, 128>}, {pipeline_mode = #tpu.pipeline_mode<synchronous>, transform_indices = @transform_6, window_bounds = array<i64: 1, 128>}, {transform_indices = @transform_7, window_bounds = array<i64: 8, 128>}]} {
    %c0 = arith.constant 0 : index
    %c0_0 = arith.constant 0 : index
    %0 = vector.load %arg1[%c0, %c0_0] : memref<8x32xf32, #tpu.memory_space<vmem>>, vector<8x32xf32>
    %c0_1 = arith.constant 0 : index
    %c0_2 = arith.constant 0 : index
    %1 = vector.load %arg2[%c0_1, %c0_2] : memref<32x128xf32, #tpu.memory_space<vmem>>, vector<32x128xf32>
    %c0_3 = arith.constant 0 : index
    %c0_4 = arith.constant 0 : index
    %2 = vector.load %arg3[%c0_3, %c0_4] : memref<1x128xf32, #tpu.memory_space<vmem>>, vector<1x128xf32>
    %cst = arith.constant dense<0.000000e+00> : vector<8x128xf32>
    %3 = tpu.matmul %0, %1, %cst {dimension_numbers = #tpu.dot_dimension_numbers<[1], [0], [0], [1], [0, 0, 1, 1], [], []>} : vector<8x32xf32>, vector<32x128xf32>, vector<8x128xf32> -> vector<8x128xf32>
    %4 = vector.broadcast %2 : vector<1x128xf32> to vector<8x128xf32>
    %5 = arith.addf %3, %4 : vector<8x128xf32>
    %cst_5 = arith.constant 0.000000e+00 : f32
    %6 = vector.broadcast %cst_5 : f32 to vector<8x128xf32>
    %7 = arith.maximumf %5, %6 : vector<8x128xf32>
    %c0_6 = arith.constant 0 : index
    %c0_7 = arith.constant 0 : index
    %8 = vector.load %arg4[%c0_6, %c0_7] : memref<128x128xf32, #tpu.memory_space<vmem>>, vector<128x128xf32>
    %c0_8 = arith.constant 0 : index
    %c0_9 = arith.constant 0 : index
    %9 = vector.load %arg5[%c0_8, %c0_9] : memref<1x128xf32, #tpu.memory_space<vmem>>, vector<1x128xf32>
    %cst_10 = arith.constant dense<0.000000e+00> : vector<8x128xf32>
    %10 = tpu.matmul %7, %8, %cst_10 {dimension_numbers = #tpu.dot_dimension_numbers<[1], [0], [0], [1], [0, 0, 1, 1], [], []>} : vector<8x128xf32>, vector<128x128xf32>, vector<8x128xf32> -> vector<8x128xf32>
    %11 = vector.broadcast %9 : vector<1x128xf32> to vector<8x128xf32>
    %12 = arith.addf %10, %11 : vector<8x128xf32>
    %cst_11 = arith.constant 0.000000e+00 : f32
    %13 = vector.broadcast %cst_11 : f32 to vector<8x128xf32>
    %14 = arith.maximumf %12, %13 : vector<8x128xf32>
    %c0_12 = arith.constant 0 : index
    %c0_13 = arith.constant 0 : index
    %15 = vector.load %arg6[%c0_12, %c0_13] : memref<128x128xf32, #tpu.memory_space<vmem>>, vector<128x128xf32>
    %c0_14 = arith.constant 0 : index
    %c0_15 = arith.constant 0 : index
    %16 = vector.load %arg7[%c0_14, %c0_15] : memref<1x128xf32, #tpu.memory_space<vmem>>, vector<1x128xf32>
    %cst_16 = arith.constant dense<0.000000e+00> : vector<8x128xf32>
    %17 = tpu.matmul %14, %15, %cst_16 {dimension_numbers = #tpu.dot_dimension_numbers<[1], [0], [0], [1], [0, 0, 1, 1], [], []>} : vector<8x128xf32>, vector<128x128xf32>, vector<8x128xf32> -> vector<8x128xf32>
    %18 = vector.broadcast %16 : vector<1x128xf32> to vector<8x128xf32>
    %19 = arith.addf %17, %18 : vector<8x128xf32>
    %c0_17 = arith.constant 0 : index
    %c0_18 = arith.constant 0 : index
    %20 = vector.load %arg8[%c0_17, %c0_18] : memref<8x128xf32, #tpu.memory_space<vmem>>, vector<8x128xf32>
    tpu.vector_store %arg8[%c0_17, %c0_18], %19 {strides = array<i32>} : memref<8x128xf32, #tpu.memory_space<vmem>>, vector<8x128xf32>,
    return
  }
  func.func @transform_0(%arg0: i32) -> (i32, i32) {
    %c0_i32 = arith.constant 0 : i32
    %c0_i32_0 = arith.constant 0 : i32
    return %arg0, %c0_i32 : i32, i32
  }
  func.func @transform_1(%arg0: i32) -> (i32, i32) {
    %c0_i32 = arith.constant 0 : i32
    %c0_i32_0 = arith.constant 0 : i32
    %c0_i32_1 = arith.constant 0 : i32
    return %c0_i32, %c0_i32_0 : i32, i32
  }
  func.func @transform_2(%arg0: i32) -> (i32, i32) {
    %c0_i32 = arith.constant 0 : i32
    %c0_i32_0 = arith.constant 0 : i32
    %c0_i32_1 = arith.constant 0 : i32
    return %c0_i32, %c0_i32_0 : i32, i32
  }
  func.func @transform_3(%arg0: i32) -> (i32, i32) {
    %c0_i32 = arith.constant 0 : i32
    %c0_i32_0 = arith.constant 0 : i32
    %c0_i32_1 = arith.constant 0 : i32
    return %c0_i32, %c0_i32_0 : i32, i32
  }
  func.func @transform_4(%arg0: i32) -> (i32, i32) {
    %c0_i32 = arith.constant 0 : i32
    %c0_i32_0 = arith.constant 0 : i32
    %c0_i32_1 = arith.constant 0 : i32
    return %c0_i32, %c0_i32_0 : i32, i32
  }
  func.func @transform_5(%arg0: i32) -> (i32, i32) {
    %c0_i32 = arith.constant 0 : i32
    %c0_i32_0 = arith.constant 0 : i32
    %c0_i32_1 = arith.constant 0 : i32
    return %c0_i32, %c0_i32_0 : i32, i32
  }
  func.func @transform_6(%arg0: i32) -> (i32, i32) {
    %c0_i32 = arith.constant 0 : i32
    %c0_i32_0 = arith.constant 0 : i32
    %c0_i32_1 = arith.constant 0 : i32
    return %c0_i32, %c0_i32_0 : i32, i32
  }
  func.func @transform_7(%arg0: i32) -> (i32, i32) {
    %c0_i32 = arith.constant 0 : i32
    %c0_i32_0 = arith.constant 0 : i32
    return %arg0, %c0_i32 : i32, i32
  }
}

</mosaic_0001>

<bundles_post_ra>
// kernel: tpu_custom_call.1
= control target key start
LH: loop header
LB: loop body
LE: loop exit
PB: predicated region body
PF: predicated region fallthrough
CT: control target
= control target key end

     0   :  { %12 = vsyncpa [#allocation3], 0  ;;  %s433_s0 = inlined_call_operand.hbm [shape: f32[8,32], index: 0, kind: input, shape index: {}]   ;;  %s434_s1 = inlined_call_operand.hbm [shape: f32[32,128], index: 1, kind: input, shape index: {}]   ;;  %s435_s2 = inlined_call_operand.vmem [shape: f32[1,128], index: 2, kind: input, shape index: {}]   ;;  %s436_s3 = inlined_call_operand.hbm [shape: f32[128,128], index: 3, kind: input, shape index: {}]   ;;  %s437_s4 = inlined_call_operand.vmem [shape: f32[1,128], index: 4, kind: input, shape index: {}]   ;;  %s438_s5 = inlined_call_operand.hbm [shape: f32[128,128], index: 5, kind: input, shape index: {}]   ;;  %s439_s6 = inlined_call_operand.vmem [shape: f32[1,128], index: 6, kind: input, shape index: {}]   ;;  %s440_s7 = inlined_call_operand.hbm [shape: f32[8,128], index: 7, kind: output, shape index: {}]  }
   0x1   :  { %13 = vsyncpa [#allocation6], 0 }
   0x2   :  { %14 = vsyncpa [#allocation9], 0  ;;  %s31_s26 = sshll.u32 %s434_s1, 4  ;;  %s32_s26 = int_to_ptr.hbm [resolvable:$true] %s31_s26 }
   0x3   :  { %15 = vsyncpa [#allocation4], 0  ;;  %s362_s27 = smov [#allocation5]   ;;  %s21_s8 = sshll.u32 %s433_s0, 4  ;;  %s22_s8 = int_to_ptr.hbm [resolvable:$true] %s21_s8 }
   0x4   :  { %s33_s28 = sshll.u32 %s362_s27, 4  ;;  %s363_s9 = smov 128   ;;  %s34_s28 = int_to_ptr.vmem [resolvable:$true] %s33_s28 }
   0x5   :  { %s364_s10 = smov 8   ;;  %s365_s11 = smov [#allocation2]  }
   0x6   :  { %39 = dma.hbm_to_vmem [thread:$0]  %s32_s26, 512, %s34_s28, [#allocation6], %s363_s9, %s363_s9, %s364_s10  }
   0x7   :  { %s23_s12 = sshll.u32 %s365_s11, 4  ;;  %s46_s15 = sshll.u32 %s436_s3, 4  ;;  %s24_s12 = int_to_ptr.vmem [resolvable:$true] %s23_s12  ;;  %s47_s15 = int_to_ptr.hbm [resolvable:$true] %s46_s15 }
   0x8   :  { %26 = dma.hbm_to_vmem [thread:$0]  %s22_s8, 128, %s24_s12, [#allocation3]  }
   0x9   :  { %s61_s17 = sshll.u32 %s438_s5, 4  ;;  %s366_s18 = smov [#allocation7]   ;;  %s62_s17 = int_to_ptr.hbm [resolvable:$true] %s61_s17 }
   0xa   :  { %s48_s19 = sshll.u32 %s366_s18, 4  ;;  %s367_s0 = smov [#allocation8]   ;;  %s49_s19 = int_to_ptr.vmem [resolvable:$true] %s48_s19 }
   0xb   :  { %54 = dma.hbm_to_vmem [thread:$0]  %s47_s15, 2048, %s49_s19, [#allocation6], %s363_s9, %s363_s9, %s364_s10  }
   0xc   :  { %s63_s20 = sshll.u32 %s367_s0, 4  ;;  %s64_s20 = int_to_ptr.vmem [resolvable:$true] %s63_s20 }
   0xd   :  { %69 = dma.hbm_to_vmem [thread:$0]  %s62_s17, 2048, %s64_s20, [#allocation9], %s363_s9, %s363_s9, %s364_s10  }
   0xe   :  { %354 = dma.done.wait [#allocation3], 128  }
   0xf   :  { %355 = vsyncadd [#allocation3], 4294967168 }
  0x10   :  { %356 = dma.done.wait [#allocation6], 2560  }
  0x11   :  { %357 = vsyncadd [#allocation6], 4294964736 }
  0x12   :  { %358 = dma.done.wait [#allocation9], 2048  }
  0x13   :  { %359 = vsyncadd [#allocation9], 4294965248  ;;  %v92_v0 = vld [vmem:[#allocation5 + $0x18] sm:$0xff]  ;;  %v91_v1 = vld [vmem:[#allocation5 + $0x10] sm:$0xff]  ;;  %vm97_vm0 = vcmask 261120   ;;  %s368_s24 = smov [#allocation10]  }
  0x14   :  { %113 = vmatpush.msra.mxu0 %v92_v0  ;;  %v137_v2 = vld [vmem:[#allocation7 + $0x78] sm:$0xff]  ;;  %v90_v3 = vld [vmem:[#allocation5 + $0x8] sm:$0xff]  ;;  %v136_v4 = vld [vmem:[#allocation7 + $0x70] sm:$0xff]  ;;  %s209_s25 = sshll.u32 %s368_s24, 4  ;;  %s211_s28 = sshll.u32 %s440_s7, 4  ;;  %s210_s25 = int_to_ptr.vmem [resolvable:$true] %s209_s25  ;;  %s212_s28 = int_to_ptr.hbm [resolvable:$true] %s211_s28 }
  0x15   :  { %142 = vmatpush.msra.mxu1 %v137_v2  ;;  %v135_v5 = vld [vmem:[#allocation7 + $0x68] sm:$0xff]  ;;  %v89_v6 = vld [vmem:[#allocation5] sm:$0xff]  ;;  %v88_v7 = vld [vmem:[#allocation2] sm:$0xff] }
  0x16   :  { %114 = vmatpush.msra.mxu0 %v91_v1  ;;  %v134_v8 = vld [vmem:[#allocation7 + $0x60] sm:$0xff]  ;;  %v133_v9 = vld [vmem:[#allocation7 + $0x58] sm:$0xff]  ;;  %v132_v10 = vld [vmem:[#allocation7 + $0x50] sm:$0xff] }
  0x17   :  { %143 = vmatpush.msra.mxu1 %v136_v4  ;;  %v131_v11 = vld [vmem:[#allocation7 + $0x48] sm:$0xff]  ;;  %v130_v12 = vld [vmem:[#allocation7 + $0x40] sm:$0xff]  ;;  %v129_v13 = vld [vmem:[#allocation7 + $0x38] sm:$0xff] }
  0x18   :  { %115 = vmatpush.msra.mxu0 %v90_v3  ;;  %v128_v14 = vld [vmem:[#allocation7 + $0x30] sm:$0xff]  ;;  %v127_v15 = vld [vmem:[#allocation7 + $0x28] sm:$0xff]  ;;  %v126_v16 = vld [vmem:[#allocation7 + $0x20] sm:$0xff] }
  0x19   :  { %144 = vmatpush.msra.mxu1 %v135_v5  ;;  %v125_v17 = vld [vmem:[#allocation7 + $0x18] sm:$0xff]  ;;  %v124_v18 = vld [vmem:[#allocation7 + $0x10] sm:$0xff]  ;;  %v123_v19 = vld [vmem:[#allocation7 + $0x8] sm:$0xff] }
  0x1a   :  { %116 = vmatpush.msra.mxu0 %v89_v6  ;;  %v122_v20 = vld [vmem:[#allocation7] sm:$0xff]  ;;  %v178_v21 = vld [vmem:[#allocation8 + $0x78] sm:$0xff]  ;;  %v177_v22 = vld [vmem:[#allocation8 + $0x70] sm:$0xff] }
  0x1b   :  { %223 = vmatmul.msk.f32.vlgmr.msra.gmra.mxu0 %vm97_vm0, %v88_v7  ;;  %145 = vmatpush.msra.mxu1 %v134_v8  ;;  %v176_v23 = vld [vmem:[#allocation8 + $0x68] sm:$0xff]  ;;  %v175_v24 = vld [vmem:[#allocation8 + $0x60] sm:$0xff]  ;;  %v174_v25 = vld [vmem:[#allocation8 + $0x58] sm:$0xff] }
  0x1c   :  { %183 = vmatpush.msra.mxu2 %v178_v21  ;;  %v173_v26 = vld [vmem:[#allocation8 + $0x50] sm:$0xff]  ;;  %v172_v27 = vld [vmem:[#allocation8 + $0x48] sm:$0xff]  ;;  %v171_v28 = vld [vmem:[#allocation8 + $0x40] sm:$0xff] }
  0x1d   :  { %146 = vmatpush.msra.mxu1 %v133_v9  ;;  %v170_v29 = vld [vmem:[#allocation8 + $0x38] sm:$0xff]  ;;  %v169_v30 = vld [vmem:[#allocation8 + $0x30] sm:$0xff]  ;;  %v168_v31 = vld [vmem:[#allocation8 + $0x28] sm:$0xff] }
  0x1e   :  { %184 = vmatpush.msra.mxu2 %v177_v22  ;;  %v167_v32 = vld [vmem:[#allocation8 + $0x20] sm:$0xff]  ;;  %v166_v33 = vld [vmem:[#allocation8 + $0x18] sm:$0xff]  ;;  %v165_v38 = vld [vmem:[#allocation8 + $0x10] sm:$0xff] }
  0x1f   :  { %147 = vmatpush.msra.mxu1 %v132_v10  ;;  %v231_v34 = vld [vmem:[%s435_s2] ss:$0 sm:$0xff]  ;;  %v164_v39 = vld [vmem:[#allocation8 + $0x8] sm:$0xff]  ;;  %v163_v40 = vld [vmem:[#allocation8] sm:$0xff] }
  0x20   :  { %185 = vmatpush.msra.mxu2 %v176_v23  ;;  %v232_v41 = vld [vmem:[%s437_s4] ss:$0 sm:$0xff] }
  0x21   :  { %148 = vmatpush.msra.mxu1 %v131_v11  ;;  %v233_v45 = vld [vmem:[%s439_s6] ss:$0 sm:$0xff] }
  0x22   :  { %186 = vmatpush.msra.mxu2 %v175_v24 }
  0x23   :  { %149 = vmatpush.msra.mxu1 %v130_v12 }
  0x24   :  { %187 = vmatpush.msra.mxu2 %v174_v25 }
  0x25   :  { %150 = vmatpush.msra.mxu1 %v129_v13 }
  0x26   :  { %188 = vmatpush.msra.mxu2 %v173_v26 }
  0x27   :  { %151 = vmatpush.msra.mxu1 %v128_v14 }
  0x28   :  { %189 = vmatpush.msra.mxu2 %v172_v27 }
  0x29   :  { %152 = vmatpush.msra.mxu1 %v127_v15 }
  0x2a   :  { %190 = vmatpush.msra.mxu2 %v171_v28 }
  0x2b   :  { %153 = vmatpush.msra.mxu1 %v126_v16 }
  0x2c   :  { %191 = vmatpush.msra.mxu2 %v170_v29 }
  0x2d   :  { %154 = vmatpush.msra.mxu1 %v125_v17 }
  0x2e   :  { %192 = vmatpush.msra.mxu2 %v169_v30 }
  0x2f   :  { %155 = vmatpush.msra.mxu1 %v124_v18 }
  0x30   :  { %193 = vmatpush.msra.mxu2 %v168_v31 }
  0x31   :  { %156 = vmatpush.msra.mxu1 %v123_v19 }
  0x32   :  { %194 = vmatpush.msra.mxu2 %v167_v32 }
  0x33   :  { %157 = vmatpush.msra.mxu1 %v122_v20 }
  0x34   :  { %195 = vmatpush.msra.mxu2 %v166_v33 }
  0x36   :  { %196 = vmatpush.msra.mxu2 %v165_v38 }
  0x38   :  { %197 = vmatpush.msra.mxu2 %v164_v39 }
  0x3a   :  { %198 = vmatpush.msra.mxu2 %v163_v40 }
  0x98   :  { %v118_v35 = vpop.f32.mrf.mxu0 }
  0x99   :  { %v119_v36 = vadd.f32 %v231_v34, %v118_v35 }
  0x9b   :  { %v121_v37 = vmax.f32 %v119_v36, 0.0 }
  0x9d   :  { %158 = vmatmul.f32.vlgmr.msra.gmra.mxu1 %v121_v37 }
 0x11a   :  { %v159_v42 = vpop.f32.mrf.mxu1 }
 0x11b   :  { %v160_v43 = vadd.f32 %v232_v41, %v159_v42 }
 0x11d   :  { %v162_v44 = vmax.f32 %v160_v43, 0.0 }
 0x11f   :  { %199 = vmatmul.f32.vlgmr.msra.gmra.mxu2 %v162_v44 }
 0x1a2   :  { %v200_v46 = vpop.f32.mrf.mxu2 }
 0x1a3   :  { %v201_v47 = vadd.f32 %v233_v45, %v200_v46 }
 0x1a5   :  { %203 = vst [vmem:[#allocation10] sm:$0xff] %v201_v47 }
 0x1a6   :  { %214 = dma.vmem_to_hbm [thread:$0]  %s210_s25, 128, %s212_s28, [#allocation4]  }
 0x1a7   :  { %360 = dma.done.wait [#allocation4], 128  }
 0x1a8   :  { %361 = vsyncadd [#allocation4], 4294967168 }
 0x1a9   :  { %219 = vsyncpa [#allocation3], 1 }
 0x1aa   :  { %220 = vsyncpa [#allocation6], 1 }
 0x1ab   :  { %221 = vsyncpa [#allocation9], 1 }
 0x1ac   :  { %222 = vsyncpa [#allocation4], 1 }

// kernel: tpu_custom_call.1
= control target key start
LH: loop header
LB: loop body
LE: loop exit
PB: predicated region body
PF: predicated region fallthrough
CT: control target
= control target key end

     0   :  { %12 = vsyncpa [#allocation3], 0  ;;  %s433_s0 = inlined_call_operand.hbm [shape: f32[8,32], index: 0, kind: input, shape index: {}]   ;;  %s434_s1 = inlined_call_operand.hbm [shape: f32[32,128], index: 1, kind: input, shape index: {}]   ;;  %s435_s2 = inlined_call_operand.vmem [shape: f32[1,128], index: 2, kind: input, shape index: {}]   ;;  %s436_s3 = inlined_call_operand.hbm [shape: f32[128,128], index: 3, kind: input, shape index: {}]   ;;  %s437_s4 = inlined_call_operand.vmem [shape: f32[1,128], index: 4, kind: input, shape index: {}]   ;;  %s438_s5 = inlined_call_operand.hbm [shape: f32[128,128], index: 5, kind: input, shape index: {}]   ;;  %s439_s6 = inlined_call_operand.vmem [shape: f32[1,128], index: 6, kind: input, shape index: {}]   ;;  %s440_s7 = inlined_call_operand.hbm [shape: f32[8,128], index: 7, kind: output, shape index: {}]  }
   0x1   :  { %13 = vsyncpa [#allocation6], 0 }
   0x2   :  { %14 = vsyncpa [#allocation9], 0  ;;  %s31_s26 = sshll.u32 %s434_s1, 4  ;;  %s32_s26 = int_to_ptr.hbm [resolvable:$true] %s31_s26 }
   0x3   :  { %15 = vsyncpa [#allocation4], 0  ;;  %s362_s27 = smov [#allocation5]   ;;  %s21_s8 = sshll.u32 %s433_s0, 4  ;;  %s22_s8 = int_to_ptr.hbm [resolvable:$true] %s21_s8 }
   0x4   :  { %s33_s28 = sshll.u32 %s362_s27, 4  ;;  %s363_s9 = smov 128   ;;  %s34_s28 = int_to_ptr.vmem [resolvable:$true] %s33_s28 }
   0x5   :  { %s364_s10 = smov 8   ;;  %s365_s11 = smov [#allocation2]  }
   0x6   :  { %39 = dma.hbm_to_vmem [thread:$0]  %s32_s26, 512, %s34_s28, [#allocation6], %s363_s9, %s363_s9, %s364_s10  }
   0x7   :  { %s23_s12 = sshll.u32 %s365_s11, 4  ;;  %s46_s15 = sshll.u32 %s436_s3, 4  ;;  %s24_s12 = int_to_ptr.vmem [resolvable:$true] %s23_s12  ;;  %s47_s15 = int_to_ptr.hbm [resolvable:$true] %s46_s15 }
   0x8   :  { %26 = dma.hbm_to_vmem [thread:$0]  %s22_s8, 128, %s24_s12, [#allocation3]  }
   0x9   :  { %s61_s17 = sshll.u32 %s438_s5, 4  ;;  %s366_s18 = smov [#allocation7]   ;;  %s62_s17 = int_to_ptr.hbm [resolvable:$true] %s61_s17 }
   0xa   :  { %s48_s19 = sshll.u32 %s366_s18, 4  ;;  %s367_s0 = smov [#allocation8]   ;;  %s49_s19 = int_to_ptr.vmem [resolvable:$true] %s48_s19 }
   0xb   :  { %54 = dma.hbm_to_vmem [thread:$0]  %s47_s15, 2048, %s49_s19, [#allocation6], %s363_s9, %s363_s9, %s364_s10  }
   0xc   :  { %s63_s20 = sshll.u32 %s367_s0, 4  ;;  %s64_s20 = int_to_ptr.vmem [resolvable:$true] %s63_s20 }
   0xd   :  { %69 = dma.hbm_to_vmem [thread:$0]  %s62_s17, 2048, %s64_s20, [#allocation9], %s363_s9, %s363_s9, %s364_s10  }
   0xe   :  { %354 = dma.done.wait [#allocation3], 128  }
   0xf   :  { %355 = vsyncadd [#allocation3], 4294967168 }
  0x10   :  { %356 = dma.done.wait [#allocation6], 2560  }
  0x11   :  { %357 = vsyncadd [#allocation6], 4294964736 }
  0x12   :  { %358 = dma.done.wait [#allocation9], 2048  }
  0x13   :  { %359 = vsyncadd [#allocation9], 4294965248  ;;  %v92_v0 = vld [vmem:[#allocation5 + $0x18] sm:$0xff]  ;;  %v91_v1 = vld [vmem:[#allocation5 + $0x10] sm:$0xff]  ;;  %vm97_vm0 = vcmask 261120   ;;  %s368_s24 = smov [#allocation10]  }
  0x14   :  { %113 = vmatpush.msra.mxu0 %v92_v0  ;;  %v137_v2 = vld [vmem:[#allocation7 + $0x78] sm:$0xff]  ;;  %v90_v3 = vld [vmem:[#allocation5 + $0x8] sm:$0xff]  ;;  %v136_v4 = vld [vmem:[#allocation7 + $0x70] sm:$0xff]  ;;  %s209_s25 = sshll.u32 %s368_s24, 4  ;;  %s211_s28 = sshll.u32 %s440_s7, 4  ;;  %s210_s25 = int_to_ptr.vmem [resolvable:$true] %s209_s25  ;;  %s212_s28 = int_to_ptr.hbm [resolvable:$true] %s211_s28 }
  0x15   :  { %142 = vmatpush.msra.mxu1 %v137_v2  ;;  %v135_v5 = vld [vmem:[#allocation7 + $0x68] sm:$0xff]  ;;  %v89_v6 = vld [vmem:[#allocation5] sm:$0xff]  ;;  %v88_v7 = vld [vmem:[#allocation2] sm:$0xff] }
  0x16   :  { %114 = vmatpush.msra.mxu0 %v91_v1  ;;  %v134_v8 = vld [vmem:[#allocation7 + $0x60] sm:$0xff]  ;;  %v133_v9 = vld [vmem:[#allocation7 + $0x58] sm:$0xff]  ;;  %v132_v10 = vld [vmem:[#allocation7 + $0x50] sm:$0xff] }
  0x17   :  { %143 = vmatpush.msra.mxu1 %v136_v4  ;;  %v131_v11 = vld [vmem:[#allocation7 + $0x48] sm:$0xff]  ;;  %v130_v12 = vld [vmem:[#allocation7 + $0x40] sm:$0xff]  ;;  %v129_v13 = vld [vmem:[#allocation7 + $0x38] sm:$0xff] }
  0x18   :  { %115 = vmatpush.msra.mxu0 %v90_v3  ;;  %v128_v14 = vld [vmem:[#allocation7 + $0x30] sm:$0xff]  ;;  %v127_v15 = vld [vmem:[#allocation7 + $0x28] sm:$0xff]  ;;  %v126_v16 = vld [vmem:[#allocation7 + $0x20] sm:$0xff] }
  0x19   :  { %144 = vmatpush.msra.mxu1 %v135_v5  ;;  %v125_v17 = vld [vmem:[#allocation7 + $0x18] sm:$0xff]  ;;  %v124_v18 = vld [vmem:[#allocation7 + $0x10] sm:$0xff]  ;;  %v123_v19 = vld [vmem:[#allocation7 + $0x8] sm:$0xff] }
  0x1a   :  { %116 = vmatpush.msra.mxu0 %v89_v6  ;;  %v122_v20 = vld [vmem:[#allocation7] sm:$0xff]  ;;  %v178_v21 = vld [vmem:[#allocation8 + $0x78] sm:$0xff]  ;;  %v177_v22 = vld [vmem:[#allocation8 + $0x70] sm:$0xff] }
  0x1b   :  { %223 = vmatmul.msk.f32.vlgmr.msra.gmra.mxu0 %vm97_vm0, %v88_v7  ;;  %145 = vmatpush.msra.mxu1 %v134_v8  ;;  %v176_v23 = vld [vmem:[#allocation8 + $0x68] sm:$0xff]  ;;  %v175_v24 = vld [vmem:[#allocation8 + $0x60] sm:$0xff]  ;;  %v174_v25 = vld [vmem:[#allocation8 + $0x58] sm:$0xff] }
  0x1c   :  { %183 = vmatpush.msra.mxu2 %v178_v21  ;;  %v173_v26 = vld [vmem:[#allocation8 + $0x50] sm:$0xff]  ;;  %v172_v27 = vld [vmem:[#allocation8 + $0x48] sm:$0xff]  ;;  %v171_v28 = vld [vmem:[#allocation8 + $0x40] sm:$0xff] }
  0x1d   :  { %146 = vmatpush.msra.mxu1 %v133_v9  ;;  %v170_v29 = vld [vmem:[#allocation8 + $0x38] sm:$0xff]  ;;  %v169_v30 = vld [vmem:[#allocation8 + $0x30] sm:$0xff]  ;;  %v168_v31 = vld [vmem:[#allocation8 + $0x28] sm:$0xff] }
  0x1e   :  { %184 = vmatpush.msra.mxu2 %v177_v22  ;;  %v167_v32 = vld [vmem:[#allocation8 + $0x20] sm:$0xff]  ;;  %v166_v33 = vld [vmem:[#allocation8 + $0x18] sm:$0xff]  ;;  %v165_v38 = vld [vmem:[#allocation8 + $0x10] sm:$0xff] }
  0x1f   :  { %147 = vmatpush.msra.mxu1 %v132_v10  ;;  %v231_v34 = vld [vmem:[%s435_s2] ss:$0 sm:$0xff]  ;;  %v164_v39 = vld [vmem:[#allocation8 + $0x8] sm:$0xff]  ;;  %v163_v40 = vld [vmem:[#allocation8] sm:$0xff] }
  0x20   :  { %185 = vmatpush.msra.mxu2 %v176_v23  ;;  %v232_v41 = vld [vmem:[%s437_s4] ss:$0 sm:$0xff] }
  0x21   :  { %148 = vmatpush.msra.mxu1 %v131_v11  ;;  %v233_v45 = vld [vmem:[%s439_s6] ss:$0 sm:$0xff] }
  0x22   :  { %186 = vmatpush.msra.mxu2 %v175_v24 }
  0x23   :  { %149 = vmatpush.msra.mxu1 %v130_v12 }
  0x24   :  { %187 = vmatpush.msra.mxu2 %v174_v25 }
  0x25   :  { %150 = vmatpush.msra.mxu1 %v129_v13 }
  0x26   :  { %188 = vmatpush.msra.mxu2 %v173_v26 }
  0x27   :  { %151 = vmatpush.msra.mxu1 %v128_v14 }
  0x28   :  { %189 = vmatpush.msra.mxu2 %v172_v27 }
  0x29   :  { %152 = vmatpush.msra.mxu1 %v127_v15 }
  0x2a   :  { %190 = vmatpush.msra.mxu2 %v171_v28 }
  0x2b   :  { %153 = vmatpush.msra.mxu1 %v126_v16 }
  0x2c   :  { %191 = vmatpush.msra.mxu2 %v170_v29 }
  0x2d   :  { %154 = vmatpush.msra.mxu1 %v125_v17 }
  0x2e   :  { %192 = vmatpush.msra.mxu2 %v169_v30 }
  0x2f   :  { %155 = vmatpush.msra.mxu1 %v124_v18 }
  0x30   :  { %193 = vmatpush.msra.mxu2 %v168_v31 }
  0x31   :  { %156 = vmatpush.msra.mxu1 %v123_v19 }
  0x32   :  { %194 = vmatpush.msra.mxu2 %v167_v32 }
  0x33   :  { %157 = vmatpush.msra.mxu1 %v122_v20 }
  0x34   :  { %195 = vmatpush.msra.mxu2 %v166_v33 }
  0x36   :  { %196 = vmatpush.msra.mxu2 %v165_v38 }
  0x38   :  { %197 = vmatpush.msra.mxu2 %v164_v39 }
  0x3a   :  { %198 = vmatpush.msra.mxu2 %v163_v40 }
  0x98   :  { %v118_v35 = vpop.f32.mrf.mxu0 }
  0x99   :  { %v119_v36 = vadd.f32 %v231_v34, %v118_v35 }
  0x9b   :  { %v121_v37 = vmax.f32 %v119_v36, 0.0 }
  0x9d   :  { %158 = vmatmul.f32.vlgmr.msra.gmra.mxu1 %v121_v37 }
 0x11a   :  { %v159_v42 = vpop.f32.mrf.mxu1 }
 0x11b   :  { %v160_v43 = vadd.f32 %v232_v41, %v159_v42 }
 0x11d   :  { %v162_v44 = vmax.f32 %v160_v43, 0.0 }
 0x11f   :  { %199 = vmatmul.f32.vlgmr.msra.gmra.mxu2 %v162_v44 }
 0x1a2   :  { %v200_v46 = vpop.f32.mrf.mxu2 }
 0x1a3   :  { %v201_v47 = vadd.f32 %v233_v45, %v200_v46 }
 0x1a5   :  { %203 = vst [vmem:[#allocation10] sm:$0xff] %v201_v47 }
 0x1a6   :  { %214 = dma.vmem_to_hbm [thread:$0]  %s210_s25, 128, %s212_s28, [#allocation4]  }
 0x1a7   :  { %360 = dma.done.wait [#allocation4], 128  }
 0x1a8   :  { %361 = vsyncadd [#allocation4], 4294967168 }
 0x1a9   :  { %219 = vsyncpa [#allocation3], 1 }
 0x1aa   :  { %220 = vsyncpa [#allocation6], 1 }
 0x1ab   :  { %221 = vsyncpa [#allocation9], 1 }
 0x1ac   :  { %222 = vsyncpa [#allocation4], 1 }

</bundles_post_ra>
